<compile_context>
chip_gen: v5e
topology: v5e:2x2
jax: 0.10.0
libtpu: 0.0.40
codegen_flags: <defaults>
</compile_context>

<pallas_src>
import functools
import math

import jax
import jax.numpy as jnp
from jax.experimental import pallas as pl
from jax.experimental.pallas import tpu as pltpu

LANE = 128          # lane width / MXU alignment
SUBLANE_BF16 = 16   # bf16 sublane packing (16, 128) vreg tile


def _round_up(x, m):
    return ((x + m - 1) // m) * m


def _tile_map(i):
    return (i, 0)


def _resident_map(i):
    return (0, 0)


def _resident_spec(shape):
    """Weights/biases resident across the grid; single-buffered when supported."""
    try:
        return pl.BlockSpec(shape, _resident_map, pipeline_mode=pl.Buffered(1))
    except TypeError:  # older JAX without pipeline_mode on BlockSpec
        return pl.BlockSpec(shape, _resident_map)


def _policy_kernel(obs_ref,
                   w_enc_ref, b_enc_ref,
                   w1_ref, b1_ref,
                   w2_ref, b2_ref,
                   w_head_ref, b_head_ref,
                   out_ref,
                   *, a_pad, std_min, std_max, sqrt_temp):
    """Fused encoder -> MLP trunk -> packed (mean|std) head for one batch tile.

    MXU inputs are bf16; accumulation and all elementwise math are f32.
    Output tile layout: [:, :a_pad] = means, [:, a_pad:] = stds.
    """
    x = obs_ref[...]                                               # [TB, Dp] bf16

    # encoder: Linear + ReLU
    h = jnp.dot(x, w_enc_ref[...], preferred_element_type=jnp.float32)
    h = jnp.maximum(h + b_enc_ref[...], 0.0)                       # [TB, Hp] f32

    # network layer 1: Linear + ReLU
    h = jnp.dot(h.astype(jnp.bfloat16), w1_ref[...],
                preferred_element_type=jnp.float32)
    h = jnp.maximum(h + b1_ref[...], 0.0)

    # network layer 2: Linear + ReLU
    h = jnp.dot(h.astype(jnp.bfloat16), w2_ref[...],
                preferred_element_type=jnp.float32)
    h = jnp.maximum(h + b2_ref[...], 0.0)

    # fused mean|std head: single [Hp, 2*Ap] matmul (256-wide N for the MXU)
    y = jnp.dot(h.astype(jnp.bfloat16), w_head_ref[...],
                preferred_element_type=jnp.float32)
    y = y + b_head_ref[...]                                        # [TB, 2*Ap] f32

    means = y[:, :a_pad]
    # std head: 'exp' parameterization + clamp(std) + temperature scaling
    stds = jnp.clip(jnp.exp(y[:, a_pad:]), std_min, std_max) * sqrt_temp

    out_ref[...] = jnp.concatenate([means, stds], axis=-1)


def prepare_policy_params(params):
    """Pad / cast / pack the weights ONCE (hoisted out of the per-step forward).

    - feature dims are zero-padded to the 128-lane width (exact: ReLU(0)=0 and
      zero weight rows/cols preserve the math); padded outputs are sliced off.
    - mean/std head weights are packed into one [Hp, 2*Ap] bf16 matrix.
    """
    obs_dim, hidden = params["w_enc"].shape
    action_dim = params["w_mean"].shape[1]

    Dp = _round_up(obs_dim, LANE)
    Hp = _round_up(hidden, LANE)
    Ap = _round_up(action_dim, LANE)

    def pad2(a, r, c, dtype):
        out = jnp.zeros((r, c), dtype)
        return out.at[:a.shape[0], :a.shape[1]].set(a.astype(dtype))

    w_head = jnp.zeros((Hp, 2 * Ap), jnp.bfloat16)
    w_head = w_head.at[:hidden, :action_dim].set(
        params["w_mean"].astype(jnp.bfloat16))
    w_head = w_head.at[:hidden, Ap:Ap + action_dim].set(
        params["w_std"].astype(jnp.bfloat16))

    b_head = jnp.zeros((1, 2 * Ap), jnp.float32)
    b_head = b_head.at[:, :action_dim].set(params["b_mean"].astype(jnp.float32))
    b_head = b_head.at[:, Ap:Ap + action_dim].set(params["b_std"].astype(jnp.float32))

    return dict(
        dims=(obs_dim, hidden, action_dim, Dp, Hp, Ap),
        w_enc=pad2(params["w_enc"], Dp, Hp, jnp.bfloat16),
        b_enc=pad2(params["b_enc"], 1, Hp, jnp.float32),
        w1=pad2(params["w1"], Hp, Hp, jnp.bfloat16),
        b1=pad2(params["b1"], 1, Hp, jnp.float32),
        w2=pad2(params["w2"], Hp, Hp, jnp.bfloat16),
        b2=pad2(params["b2"], 1, Hp, jnp.float32),
        w_head=w_head,
        b_head=b_head,
    )


def policy_forward(observations, prepared, *, temperature=1.0,
                   std_min=1e-5, std_max=10.0, block_b=256):
    """Returns (means, stds) — the parameters of the policy's Normal distribution."""
    obs_dim, hidden, action_dim, Dp, Hp, Ap = prepared["dims"]
    B = observations.shape[0]

    # Batch tiling: 16-row (bf16 sublane) multiples; guarantee >= 2 grid steps
    # whenever the batch permits so v7x's 2 TensorCores both get work.
    B16 = _round_up(B, SUBLANE_BF16)
    n16 = B16 // SUBLANE_BF16
    tiles = min(max(1, block_b // SUBLANE_BF16), n16)
    if n16 >= 2:
        tiles = min(tiles, -(-n16 // 2))
    TB = tiles * SUBLANE_BF16
    Bp = _round_up(B16, TB)
    grid = (Bp // TB,)

    # Per-call input padding (only the observations — weights are pre-padded).
    obs_p = jnp.zeros((Bp, Dp), jnp.bfloat16)
    obs_p = obs_p.at[:B, :obs_dim].set(observations.astype(jnp.bfloat16))

    in_specs = [
        pl.BlockSpec((TB, Dp), _tile_map),     # obs (pipelined, double-buffered)
        _resident_spec((Dp, Hp)),              # w_enc
        _resident_spec((1, Hp)),               # b_enc
        _resident_spec((Hp, Hp)),              # w1
        _resident_spec((1, Hp)),               # b1
        _resident_spec((Hp, Hp)),              # w2
        _resident_spec((1, Hp)),               # b2
        _resident_spec((Hp, 2 * Ap)),          # w_head (mean|std packed)
        _resident_spec((1, 2 * Ap)),           # b_head
    ]
    out_specs = pl.BlockSpec((TB, 2 * Ap), _tile_map)      # (means|stds) packed
    out_shape = jax.ShapeDtypeStruct((Bp, 2 * Ap), jnp.float32)

    # VMEM budget: single-buffered weights + double-buffered obs/out tiles +
    # f32 activation headroom; add margin in case weights fall back to 2 buffers.
    weight_bytes = (Dp * Hp + 2 * Hp * Hp + Hp * 2 * Ap) * 2 + (3 * Hp + 2 * Ap) * 4
    io_bytes = 2 * TB * Dp * 2 + 2 * TB * 2 * Ap * 4
    act_bytes = 4 * TB * Hp * 4
    vmem_limit = min(64 << 20,
                     max(16 << 20, 2 * weight_bytes + io_bytes + act_bytes + (2 << 20)))

    flops = 2 * Bp * (Dp * Hp + 2 * Hp * Hp + Hp * 2 * Ap)
    bytes_accessed = (
        obs_p.size * 2
        + (Dp * Hp + 2 * Hp * Hp + Hp * 2 * Ap) * 2
        + (3 * Hp + 2 * Ap) * 4
        + Bp * 2 * Ap * 4
    )

    kernel = functools.partial(
        _policy_kernel,
        a_pad=Ap,
        std_min=float(std_min),
        std_max=float(std_max),
        sqrt_temp=float(math.sqrt(temperature)),
    )

    out = pl.pallas_call(
        kernel,
        grid=grid,
        in_specs=in_specs,
        out_specs=out_specs,
        out_shape=out_shape,
        compiler_params=pltpu.CompilerParams(
            dimension_semantics=("parallel",),
            vmem_limit_bytes=int(vmem_limit)),
        cost_estimate=pl.CostEstimate(
            flops=flops,
            transcendentals=Bp * Ap,
            bytes_accessed=bytes_accessed),
    )(obs_p,
      prepared["w_enc"], prepared["b_enc"],
      prepared["w1"], prepared["b1"],
      prepared["w2"], prepared["b2"],
      prepared["w_head"], prepared["b_head"])

    means = out[:B, :action_dim]
    stds = out[:B, Ap:Ap + action_dim]
    return means, stds


def init_params(key, obs_dim, hidden, action_dim):
    """Deterministic PyTorch-style Linear init: U(-1/sqrt(fan_in), 1/sqrt(fan_in))."""
    def linear(k, fan_in, fan_out):
        kw, kb = jax.random.split(k)
        bound = 1.0 / math.sqrt(fan_in)
        w = jax.random.uniform(kw, (fan_in, fan_out), jnp.float32, -bound, bound)
        b = jax.random.uniform(kb, (1, fan_out), jnp.float32, -bound, bound)
        return w, b

    k_enc, k1, k2, k_mean, k_std = jax.random.split(key, 5)
    w_enc, b_enc = linear(k_enc, obs_dim, hidden)
    w1, b1 = linear(k1, hidden, hidden)
    w2, b2 = linear(k2, hidden, hidden)
    # mean_layer / std_layer with init_final=None -> default_init(); synthetic
    # uniform init here (no checkpoint involved).
    w_mean, b_mean = linear(k_mean, hidden, action_dim)
    w_std, b_std = linear(k_std, hidden, action_dim)
    return dict(w_enc=w_enc, b_enc=b_enc, w1=w1, b1=b1, w2=w2, b2=b2,
                w_mean=w_mean, b_mean=b_mean, w_std=w_std, b_std=b_std)


def reference_forward(obs, p, *, temperature=1.0, std_min=1e-5, std_max=10.0):
    """Pure-JAX reference mirroring the kernel's bf16-input / f32-accumulate math."""
    bf = lambda a: a.astype(jnp.bfloat16)

    def mm(x, w):
        return jnp.dot(bf(x), bf(w), preferred_element_type=jnp.float32)

    h = jnp.maximum(mm(obs, p["w_enc"]) + p["b_enc"], 0.0)
    h = jnp.maximum(mm(h, p["w1"]) + p["b1"], 0.0)
    h = jnp.maximum(mm(h, p["w2"]) + p["b2"], 0.0)
    means = mm(h, p["w_mean"]) + p["b_mean"]
    log_stds = mm(h, p["w_std"]) + p["b_std"]
    stds = jnp.clip(jnp.exp(log_stds), std_min, std_max) * math.sqrt(temperature)
    return means, stds


if __name__ == "__main__":
    key = jax.random.PRNGKey(0)
    k_obs, k_params = jax.random.split(key)

    B, OBS_DIM, HIDDEN, ACTION_DIM = 8, 16, 32, 4
    observations = jax.random.normal(k_obs, (B, OBS_DIM), jnp.float32)
    params = init_params(k_params, OBS_DIM, HIDDEN, ACTION_DIM)

    prepared = prepare_policy_params(params)   # one-time padding/packing (hoisted)

    means, stds = policy_forward(observations, prepared, temperature=1.0)
    means = jax.block_until_ready(means)
    stds = jax.block_until_ready(stds)

    ref_means, ref_stds = reference_forward(observations, params)

    assert means.shape == (B, ACTION_DIM)
    assert stds.shape == (B, ACTION_DIM)
    assert bool(jnp.all(stds > 0.0))
    assert jnp.allclose(means, ref_means, atol=1e-3, rtol=1e-3)
    assert jnp.allclose(stds, ref_stds, atol=1e-3, rtol=1e-3)

    # Also exercise a batch large enough to produce a multi-step (megacore) grid.
    B2 = 40
    obs2 = jax.random.normal(jax.random.PRNGKey(1), (B2, OBS_DIM), jnp.float32)
    m2, s2 = policy_forward(obs2, prepared, temperature=0.5)
    m2 = jax.block_until_ready(m2)
    rm2, rs2 = reference_forward(obs2, params, temperature=0.5)
    assert m2.shape == (B2, ACTION_DIM) and s2.shape == (B2, ACTION_DIM)
    assert jnp.allclose(m2, rm2, atol=1e-3, rtol=1e-3)
    assert jnp.allclose(s2, rs2, atol=1e-3, rtol=1e-3)

    print("KERNEL_OK")
</pallas_src>

<mosaic_0001>
module attributes {stable_mosaic.version = 11 : i64} {
  func.func @_policy_kernel(%arg0: i32, %arg1: memref<16x128xbf16, #tpu.memory_space<vmem>>, %arg2: memref<128x128xbf16, #tpu.memory_space<vmem>>, %arg3: memref<1x128xf32, #tpu.memory_space<vmem>>, %arg4: memref<128x128xbf16, #tpu.memory_space<vmem>>, %arg5: memref<1x128xf32, #tpu.memory_space<vmem>>, %arg6: memref<128x128xbf16, #tpu.memory_space<vmem>>, %arg7: memref<1x128xf32, #tpu.memory_space<vmem>>, %arg8: memref<128x256xbf16, #tpu.memory_space<vmem>>, %arg9: memref<1x256xf32, #tpu.memory_space<vmem>>, %arg10: memref<16x256xf32, #tpu.memory_space<vmem>>) attributes {dimension_semantics = [#tpu.dimension_semantics<parallel>], iteration_bounds = array<i64: 1>, scalar_prefetch = 0 : i64, scratch_operands = 0 : i64, tpu.core_type = #tpu.core_type<tc>, window_params = [{transform_indices = @transform_0, window_bounds = array<i64: 16, 128>}, {pipeline_mode = #tpu.pipeline_mode<synchronous>, transform_indices = @transform_1, window_bounds = array<i64: 128, 128>}, {pipeline_mode = #tpu.pipeline_mode<synchronous>, transform_indices = @transform_2, window_bounds = array<i64: 1, 128>}, {pipeline_mode = #tpu.pipeline_mode<synchronous>, transform_indices = @transform_3, window_bounds = array<i64: 128, 128>}, {pipeline_mode = #tpu.pipeline_mode<synchronous>, transform_indices = @transform_4, window_bounds = array<i64: 1, 128>}, {pipeline_mode = #tpu.pipeline_mode<synchronous>, transform_indices = @transform_5, window_bounds = array<i64: 128, 128>}, {pipeline_mode = #tpu.pipeline_mode<synchronous>, transform_indices = @transform_6, window_bounds = array<i64: 1, 128>}, {pipeline_mode = #tpu.pipeline_mode<synchronous>, transform_indices = @transform_7, window_bounds = array<i64: 128, 256>}, {pipeline_mode = #tpu.pipeline_mode<synchronous>, transform_indices = @transform_8, window_bounds = array<i64: 1, 256>}, {transform_indices = @transform_9, window_bounds = array<i64: 16, 256>}]} {
    %c0 = arith.constant 0 : index
    %c0_0 = arith.constant 0 : index
    %0 = vector.load %arg1[%c0, %c0_0] : memref<16x128xbf16, #tpu.memory_space<vmem>>, vector<16x128xbf16>
    %c0_1 = arith.constant 0 : index
    %c0_2 = arith.constant 0 : index
    %1 = vector.load %arg2[%c0_1, %c0_2] : memref<128x128xbf16, #tpu.memory_space<vmem>>, vector<128x128xbf16>
    %cst = arith.constant dense<0.000000e+00> : vector<16x128xf32>
    %2 = tpu.matmul %0, %1, %cst {dimension_numbers = #tpu.dot_dimension_numbers<[1], [0], [0], [1], [0, 0, 1, 1], [], []>} : vector<16x128xbf16>, vector<128x128xbf16>, vector<16x128xf32> -> vector<16x128xf32>
    %c0_3 = arith.constant 0 : index
    %c0_4 = arith.constant 0 : index
    %3 = vector.load %arg3[%c0_3, %c0_4] : memref<1x128xf32, #tpu.memory_space<vmem>>, vector<1x128xf32>
    %4 = vector.broadcast %3 : vector<1x128xf32> to vector<16x128xf32>
    %5 = arith.addf %2, %4 : vector<16x128xf32>
    %cst_5 = arith.constant 0.000000e+00 : f32
    %6 = vector.broadcast %cst_5 : f32 to vector<16x128xf32>
    %7 = arith.maximumf %5, %6 : vector<16x128xf32>
    %8 = arith.truncf %7 : vector<16x128xf32> to vector<16x128xbf16>
    %c0_6 = arith.constant 0 : index
    %c0_7 = arith.constant 0 : index
    %9 = vector.load %arg4[%c0_6, %c0_7] : memref<128x128xbf16, #tpu.memory_space<vmem>>, vector<128x128xbf16>
    %cst_8 = arith.constant dense<0.000000e+00> : vector<16x128xf32>
    %10 = tpu.matmul %8, %9, %cst_8 {dimension_numbers = #tpu.dot_dimension_numbers<[1], [0], [0], [1], [0, 0, 1, 1], [], []>} : vector<16x128xbf16>, vector<128x128xbf16>, vector<16x128xf32> -> vector<16x128xf32>
    %c0_9 = arith.constant 0 : index
    %c0_10 = arith.constant 0 : index
    %11 = vector.load %arg5[%c0_9, %c0_10] : memref<1x128xf32, #tpu.memory_space<vmem>>, vector<1x128xf32>
    %12 = vector.broadcast %11 : vector<1x128xf32> to vector<16x128xf32>
    %13 = arith.addf %10, %12 : vector<16x128xf32>
    %cst_11 = arith.constant 0.000000e+00 : f32
    %14 = vector.broadcast %cst_11 : f32 to vector<16x128xf32>
    %15 = arith.maximumf %13, %14 : vector<16x128xf32>
    %16 = arith.truncf %15 : vector<16x128xf32> to vector<16x128xbf16>
    %c0_12 = arith.constant 0 : index
    %c0_13 = arith.constant 0 : index
    %17 = vector.load %arg6[%c0_12, %c0_13] : memref<128x128xbf16, #tpu.memory_space<vmem>>, vector<128x128xbf16>
    %cst_14 = arith.constant dense<0.000000e+00> : vector<16x128xf32>
    %18 = tpu.matmul %16, %17, %cst_14 {dimension_numbers = #tpu.dot_dimension_numbers<[1], [0], [0], [1], [0, 0, 1, 1], [], []>} : vector<16x128xbf16>, vector<128x128xbf16>, vector<16x128xf32> -> vector<16x128xf32>
    %c0_15 = arith.constant 0 : index
    %c0_16 = arith.constant 0 : index
    %19 = vector.load %arg7[%c0_15, %c0_16] : memref<1x128xf32, #tpu.memory_space<vmem>>, vector<1x128xf32>
    %20 = vector.broadcast %19 : vector<1x128xf32> to vector<16x128xf32>
    %21 = arith.addf %18, %20 : vector<16x128xf32>
    %cst_17 = arith.constant 0.000000e+00 : f32
    %22 = vector.broadcast %cst_17 : f32 to vector<16x128xf32>
    %23 = arith.maximumf %21, %22 : vector<16x128xf32>
    %24 = arith.truncf %23 : vector<16x128xf32> to vector<16x128xbf16>
    %c0_18 = arith.constant 0 : index
    %c0_19 = arith.constant 0 : index
    %25 = vector.load %arg8[%c0_18, %c0_19] : memref<128x256xbf16, #tpu.memory_space<vmem>>, vector<128x256xbf16>
    %cst_20 = arith.constant dense<0.000000e+00> : vector<16x256xf32>
    %26 = tpu.matmul %24, %25, %cst_20 {dimension_numbers = #tpu.dot_dimension_numbers<[1], [0], [0], [1], [0, 0, 1, 1], [], []>} : vector<16x128xbf16>, vector<128x256xbf16>, vector<16x256xf32> -> vector<16x256xf32>
    %c0_21 = arith.constant 0 : index
    %c0_22 = arith.constant 0 : index
    %27 = vector.load %arg9[%c0_21, %c0_22] : memref<1x256xf32, #tpu.memory_space<vmem>>, vector<1x256xf32>
    %28 = vector.broadcast %27 : vector<1x256xf32> to vector<16x256xf32>
    %29 = arith.addf %26, %28 : vector<16x256xf32>
    %30 = vector.extract_strided_slice %29 {offsets = [0, 0], sizes = [16, 128], strides = [1, 1]} : vector<16x256xf32> to vector<16x128xf32>
    %31 = vector.extract_strided_slice %29 {offsets = [0, 128], sizes = [16, 128], strides = [1, 1]} : vector<16x256xf32> to vector<16x128xf32>
    %32 = math.exp %31 : vector<16x128xf32>
    %cst_23 = arith.constant 9.99999974E-6 : f32
    %cst_24 = arith.constant 1.000000e+01 : f32
    %33 = vector.broadcast %cst_23 : f32 to vector<16x128xf32>
    %34 = arith.maximumf %33, %32 : vector<16x128xf32>
    %35 = vector.broadcast %cst_24 : f32 to vector<16x128xf32>
    %36 = arith.minimumf %35, %34 : vector<16x128xf32>
    %cst_25 = arith.constant 1.000000e+00 : f32
    %37 = vector.broadcast %cst_25 : f32 to vector<16x128xf32>
    %38 = arith.mulf %36, %37 : vector<16x128xf32>
    %39 = tpu.concatenate %30, %38 in 1 : vector<16x128xf32>, vector<16x128xf32> -> vector<16x256xf32>
    %c0_26 = arith.constant 0 : index
    %c0_27 = arith.constant 0 : index
    %40 = vector.load %arg10[%c0_26, %c0_27] : memref<16x256xf32, #tpu.memory_space<vmem>>, vector<16x256xf32>
    tpu.vector_store %arg10[%c0_26, %c0_27], %39 {strides = array<i32>} : memref<16x256xf32, #tpu.memory_space<vmem>>, vector<16x256xf32>,
    return
  }
  func.func @transform_0(%arg0: i32) -> (i32, i32) {
    %c0_i32 = arith.constant 0 : i32
    %c0_i32_0 = arith.constant 0 : i32
    return %arg0, %c0_i32 : i32, i32
  }
  func.func @transform_1(%arg0: i32) -> (i32, i32) {
    %c0_i32 = arith.constant 0 : i32
    %c0_i32_0 = arith.constant 0 : i32
    %c0_i32_1 = arith.constant 0 : i32
    return %c0_i32, %c0_i32_0 : i32, i32
  }
  func.func @transform_2(%arg0: i32) -> (i32, i32) {
    %c0_i32 = arith.constant 0 : i32
    %c0_i32_0 = arith.constant 0 : i32
    %c0_i32_1 = arith.constant 0 : i32
    return %c0_i32, %c0_i32_0 : i32, i32
  }
  func.func @transform_3(%arg0: i32) -> (i32, i32) {
    %c0_i32 = arith.constant 0 : i32
    %c0_i32_0 = arith.constant 0 : i32
    %c0_i32_1 = arith.constant 0 : i32
    return %c0_i32, %c0_i32_0 : i32, i32
  }
  func.func @transform_4(%arg0: i32) -> (i32, i32) {
    %c0_i32 = arith.constant 0 : i32
    %c0_i32_0 = arith.constant 0 : i32
    %c0_i32_1 = arith.constant 0 : i32
    return %c0_i32, %c0_i32_0 : i32, i32
  }
  func.func @transform_5(%arg0: i32) -> (i32, i32) {
    %c0_i32 = arith.constant 0 : i32
    %c0_i32_0 = arith.constant 0 : i32
    %c0_i32_1 = arith.constant 0 : i32
    return %c0_i32, %c0_i32_0 : i32, i32
  }
  func.func @transform_6(%arg0: i32) -> (i32, i32) {
    %c0_i32 = arith.constant 0 : i32
    %c0_i32_0 = arith.constant 0 : i32
    %c0_i32_1 = arith.constant 0 : i32
    return %c0_i32, %c0_i32_0 : i32, i32
  }
  func.func @transform_7(%arg0: i32) -> (i32, i32) {
    %c0_i32 = arith.constant 0 : i32
    %c0_i32_0 = arith.constant 0 : i32
    %c0_i32_1 = arith.constant 0 : i32
    return %c0_i32, %c0_i32_0 : i32, i32
  }
  func.func @transform_8(%arg0: i32) -> (i32, i32) {
    %c0_i32 = arith.constant 0 : i32
    %c0_i32_0 = arith.constant 0 : i32
    %c0_i32_1 = arith.constant 0 : i32
    return %c0_i32, %c0_i32_0 : i32, i32
  }
  func.func @transform_9(%arg0: i32) -> (i32, i32) {
    %c0_i32 = arith.constant 0 : i32
    %c0_i32_0 = arith.constant 0 : i32
    return %arg0, %c0_i32 : i32, i32
  }
}

</mosaic_0001>

<bundles_post_ra>
// kernel: tpu_custom_call.1
= control target key start
LH: loop header
LB: loop body
LE: loop exit
PB: predicated region body
PF: predicated region fallthrough
CT: control target
= control target key end

     0   :  { %14 = vsyncpa [#allocation3], 0  ;;  %s1060_s0 = inlined_call_operand.hbm [shape: bf16[16,128], index: 0, kind: input, shape index: {}]   ;;  %s1061_s1 = inlined_call_operand.hbm [shape: bf16[128,128], index: 1, kind: input, shape index: {}]   ;;  %s1062_s2 = inlined_call_operand.vmem [shape: f32[1,128], index: 2, kind: input, shape index: {}]   ;;  %s1063_s3 = inlined_call_operand.hbm [shape: bf16[128,128], index: 3, kind: input, shape index: {}]   ;;  %s1064_s4 = inlined_call_operand.hbm [shape: f32[1,128], index: 4, kind: input, shape index: {}]   ;;  %s1065_s5 = inlined_call_operand.hbm [shape: bf16[128,128], index: 5, kind: input, shape index: {}]   ;;  %s1066_s6 = inlined_call_operand.vmem [shape: f32[1,128], index: 6, kind: input, shape index: {}]   ;;  %s1067_s7 = inlined_call_operand.hbm [shape: bf16[128,256], index: 7, kind: input, shape index: {}]   ;;  %s1068_s8 = inlined_call_operand.vmem [shape: f32[1,256], index: 8, kind: input, shape index: {}]   ;;  %s1069_s9 = inlined_call_operand.hbm [shape: f32[16,256], index: 9, kind: output, shape index: {}]  }
   0x1   :  { %15 = vsyncpa [#allocation6], 0 }
   0x2   :  { %16 = vsyncpa [#allocation9], 0 }
   0x3   :  { %17 = vsyncpa [#allocation12], 0 }
   0x4   :  { %18 = vsyncpa [#allocation4], 0  ;;  %s36_s11 = sshll.u32 %s1061_s1, 4  ;;  %s955_s12 = smov [#allocation5]   ;;  %s37_s11 = int_to_ptr.hbm [resolvable:$true] %s36_s11 }
   0x5   :  { %s38_s13 = sshll.u32 %s955_s12, 4  ;;  %s65_s16 = sshll.u32 %s1064_s4, 4  ;;  %s39_s13 = int_to_ptr.vmem [resolvable:$true] %s38_s13  ;;  %s66_s16 = int_to_ptr.hbm [resolvable:$true] %s65_s16 }
   0x6   :  { %s956_s17 = smov 64   ;;  %s957_s18 = smov 4  }
   0x7   :  { %44 = dma.hbm_to_vmem [thread:$0]  %s37_s11, 1024, %s39_s13, [#allocation6], %s956_s17, %s956_s17, %s957_s18  }
   0x8   :  { %s958_s19 = smov [#allocation8]   ;;  %s23_s1 = sshll.u32 %s1060_s0, 4  ;;  %s24_s1 = int_to_ptr.hbm [resolvable:$true] %s23_s1 }
   0x9   :  { %s67_s20 = sshll.u32 %s958_s19, 4  ;;  %s51_s4 = sshll.u32 %s1063_s3, 4  ;;  %s68_s20 = int_to_ptr.vmem [resolvable:$true] %s67_s20  ;;  %s52_s4 = int_to_ptr.hbm [resolvable:$true] %s51_s4 }
   0xa   :  { %70 = dma.hbm_to_vmem [thread:$0]  %s66_s16, 16, %s68_s20, [#allocation9]  }
   0xb   :  { %s959_s25 = smov [#allocation2]   ;;  %s960_s27 = smov [#allocation7]  }
   0xc   :  { %s25_s26 = sshll.u32 %s959_s25, 4  ;;  %s53_s28 = sshll.u32 %s960_s27, 4  ;;  %s26_s26 = int_to_ptr.vmem [resolvable:$true] %s25_s26  ;;  %s54_s28 = int_to_ptr.vmem [resolvable:$true] %s53_s28 }
   0xd   :  { %31 = dma.hbm_to_vmem [thread:$0]  %s24_s1, 128, %s26_s26, [#allocation3], %s956_s17, %s956_s17, %s957_s18  }
   0xe   :  { %s75_s0 = sshll.u32 %s1065_s5, 4  ;;  %s90_s11 = sshll.u32 %s1067_s7, 4  ;;  %s76_s0 = int_to_ptr.hbm [resolvable:$true] %s75_s0  ;;  %s91_s11 = int_to_ptr.hbm [resolvable:$true] %s90_s11 }
   0xf   :  { %59 = dma.hbm_to_vmem [thread:$0]  %s52_s4, 1024, %s54_s28, [#allocation6], %s956_s17, %s956_s17, %s957_s18  }
  0x10   :  { %s961_s12 = smov [#allocation10]   ;;  %s962_s14 = smov [#allocation11]  }
  0x11   :  { %s77_s13 = sshll.u32 %s961_s12, 4  ;;  %s92_s5 = sshll.u32 %s962_s14, 4  ;;  %s78_s13 = int_to_ptr.vmem [resolvable:$true] %s77_s13  ;;  %s93_s5 = int_to_ptr.vmem [resolvable:$true] %s92_s5 }
  0x12   :  { %83 = dma.hbm_to_vmem [thread:$0]  %s76_s0, 1024, %s78_s13, [#allocation9], %s956_s17, %s956_s17, %s957_s18  }
  0x13   :  { %s963_s15 = smov 128   ;;  %s964_s16 = smov 8  }
  0x14   :  { %98 = dma.hbm_to_vmem [thread:$0]  %s91_s11, 2048, %s93_s5, [#allocation12], %s963_s15, %s963_s15, %s964_s16  }
  0x15   :  { %945 = dma.done.wait [#allocation3], 128  }
  0x16   :  { %946 = vsyncadd [#allocation3], 4294967168 }
  0x17   :  { %947 = dma.done.wait [#allocation6], 2048  }
  0x18   :  { %948 = vsyncadd [#allocation6], 4294965248 }
  0x19   :  { %949 = dma.done.wait [#allocation9], 1040  }
  0x1a   :  { %950 = vsyncadd [#allocation9], 4294966256 }
  0x1b   :  { %951 = dma.done.wait [#allocation12], 2048  }
  0x1c   :  { %952 = vsyncadd [#allocation12], 4294965248  ;;  %v724_v0 = vld [vmem:[#allocation5 + $0x38] sm:$0xff]  ;;  %v723_v1 = vld [vmem:[#allocation5 + $0x30] sm:$0xff]  ;;  %s536_s1 = sshll.u32 %s1069_s9, 4  ;;  %s966_s23 = smov 256   ;;  %s537_s1 = int_to_ptr.hbm [resolvable:$true] %s536_s1 }
  0x1d   :  { %201 = vmatpush.bf16.msra.mxu0 %v724_v0  ;;  %v732_v2 = vld [vmem:[#allocation7 + $0x38] sm:$0xff]  ;;  %v731_v3 = vld [vmem:[#allocation7 + $0x30] sm:$0xff]  ;;  %v722_v4 = vld [vmem:[#allocation5 + $0x28] sm:$0xff]  ;;  %s967_s24 = smov 16  }
  0x1e   :  { %286 = vmatpush.bf16.msra.mxu1 %v732_v2  ;;  %v730_v5 = vld [vmem:[#allocation7 + $0x28] sm:$0xff]  ;;  %v721_v6 = vld [vmem:[#allocation5 + $0x20] sm:$0xff]  ;;  %v720_v8 = vld [vmem:[#allocation5 + $0x18] sm:$0xff] }
  0x1f   :  { %v729_v7 = vld [vmem:[#allocation7 + $0x20] sm:$0xff]  ;;  %v719_v9 = vld [vmem:[#allocation5 + $0x10] sm:$0xff]  ;;  %v718_v10 = vld [vmem:[#allocation5 + $0x8] sm:$0xff] }
  0x20   :  { %v717_v11 = vld [vmem:[#allocation5] sm:$0xff]  ;;  %v716_v12 = vld [vmem:[#allocation2] sm:$0xff]  ;;  %v727_v14 = vld [vmem:[#allocation7 + $0x10] sm:$0xff] }
  0x21   :  { %202 = vmatpush.bf16.msra.mxu0 %v723_v1  ;;  %v728_v13 = vld [vmem:[#allocation7 + $0x18] sm:$0xff]  ;;  %v726_v15 = vld [vmem:[#allocation7 + $0x8] sm:$0xff]  ;;  %v725_v16 = vld [vmem:[#allocation7] sm:$0xff] }
  0x22   :  { %287 = vmatpush.bf16.msra.mxu1 %v731_v3  ;;  %v740_v17 = vld [vmem:[#allocation10 + $0x38] sm:$0xff]  ;;  %v739_v18 = vld [vmem:[#allocation10 + $0x30] sm:$0xff]  ;;  %v738_v19 = vld [vmem:[#allocation10 + $0x28] sm:$0xff] }
  0x23   :  { %371 = vmatpush.bf16.msra.mxu2 %v740_v17  ;;  %v737_v20 = vld [vmem:[#allocation10 + $0x20] sm:$0xff]  ;;  %v770_v22 = vld [vmem:[%s1062_s2] ss:$0 sm:$0xff]  ;;  %v736_v29 = vld [vmem:[#allocation10 + $0x18] sm:$0xff] }
  0x24   :  { %v735_v30 = vld [vmem:[#allocation10 + $0x10] sm:$0xff]  ;;  %v734_v31 = vld [vmem:[#allocation10 + $0x8] sm:$0xff]  ;;  %v733_v32 = vld [vmem:[#allocation10] sm:$0xff] }
  0x25   :  { %203 = vmatpush.bf16.msra.mxu0 %v722_v4  ;;  %v710_v33 = vld [vmem:[#allocation11 + $0x70] sm:$0xf]  ;;  %v756_v34 = vld [vmem:[#allocation11 + $0x74] sm:$0xf0]  ;;  %v755_v35 = vld [vmem:[#allocation11 + $0x74] sm:$0xf] }
  0x26   :  { %288 = vmatpush.bf16.msra.mxu1 %v730_v5  ;;  %v711_v36 = vor.u32 %v756_v34, %v710_v33  ;;  %v712_v37 = vld [vmem:[#allocation11 + $0x78] sm:$0xf0]  ;;  %v702_v38 = vld [vmem:[#allocation11 + $0x60] sm:$0xf]  ;;  %v754_v39 = vld [vmem:[#allocation11 + $0x64] sm:$0xf0] }
  0x27   :  { %372 = vmatpush.bf16.msra.mxu2 %v739_v18  ;;  %v715_v40 = vor.u32 %v755_v35, %v712_v37  ;;  %v753_v41 = vld [vmem:[#allocation11 + $0x64] sm:$0xf]  ;;  %v704_v42 = vld [vmem:[#allocation11 + $0x68] sm:$0xf0]  ;;  %v703_v43 = vor.u32 %v754_v39, %v702_v38  ;;  %v694_v45 = vld [vmem:[#allocation11 + $0x50] sm:$0xf] }
  0x28   :  { %490 = vmatpush.bf16.msra.mxu3 %v711_v36  ;;  %v707_v44 = vor.u32 %v753_v41, %v704_v42  ;;  %v752_v46 = vld [vmem:[#allocation11 + $0x54] sm:$0xf0]  ;;  %v751_v47 = vld [vmem:[#allocation11 + $0x54] sm:$0xf]  ;;  %v696_v48 = vld [vmem:[#allocation11 + $0x58] sm:$0xf0] }
  0x29   :  { %204 = vmatpush.bf16.msra.mxu0 %v721_v6  ;;  %v695_v49 = vor.u32 %v752_v46, %v694_v45  ;;  %v699_v50 = vor.u32 %v751_v47, %v696_v48  ;;  %v686_v51 = vld [vmem:[#allocation11 + $0x40] sm:$0xf]  ;;  %v750_v52 = vld [vmem:[#allocation11 + $0x44] sm:$0xf0]  ;;  %v749_v53 = vld [vmem:[#allocation11 + $0x44] sm:$0xf] }
  0x2a   :  { %289 = vmatpush.bf16.msra.mxu1 %v729_v7  ;;  %v688_v54 = vld [vmem:[#allocation11 + $0x48] sm:$0xf0]  ;;  %v687_v55 = vor.u32 %v750_v52, %v686_v51  ;;  %v771_v58 = vld [vmem:[#allocation8] ss:$0 sm:$0xff]  ;;  %v678_v1 = vld [vmem:[#allocation11 + $0x30] sm:$0xf] }
  0x2b   :  { %373 = vmatpush.bf16.msra.mxu2 %v738_v19  ;;  %v691_v56 = vor.u32 %v749_v53, %v688_v54  ;;  %v748_v2 = vld [vmem:[#allocation11 + $0x34] sm:$0xf0]  ;;  %v747_v3 = vld [vmem:[#allocation11 + $0x34] sm:$0xf]  ;;  %v680_v5 = vld [vmem:[#allocation11 + $0x38] sm:$0xf0] }
  0x2c   :  { %491 = vmatpush.bf16.msra.mxu3 %v703_v43  ;;  %v679_v4 = vor.u32 %v748_v2, %v678_v1  ;;  %v683_v6 = vor.u32 %v747_v3, %v680_v5  ;;  %v670_v7 = vld [vmem:[#allocation11 + $0x20] sm:$0xf]  ;;  %v664_v17 = vld [vmem:[#allocation11 + $0x18] sm:$0xf0]  ;;  %v404_v33 = vld [vmem:[%s1068_s8] sm:$0x3] }
  0x2d   :  { %205 = vmatpush.bf16.msra.mxu0 %v720_v8  ;;  %v746_v8 = vld [vmem:[#allocation11 + $0x24] sm:$0xf0]  ;;  %v654_v19 = vld [vmem:[#allocation11] sm:$0xf]  ;;  %v407_v34 = vperm.slane %v404_v33, 1  ;;  %v406_v38 = vperm.slane %v404_v33, 0 }
  0x2e   :  { %290 = vmatpush.bf16.msra.mxu1 %v728_v13  ;;  %v662_v13 = vld [vmem:[#allocation11 + $0x10] sm:$0xf] }
  0x2f   :  { %374 = vmatpush.bf16.msra.mxu2 %v737_v20  ;;  %v742_v20 = vld [vmem:[#allocation11 + $0x4] sm:$0xf0] }
  0x30   :  { %492 = vmatpush.bf16.msra.mxu3 %v695_v49 }
  0x31   :  { %206 = vmatpush.bf16.msra.mxu0 %v719_v9  ;;  %v745_v9 = vld [vmem:[#allocation11 + $0x24] sm:$0xf] }
  0x32   :  { %291 = vmatpush.bf16.msra.mxu1 %v727_v14  ;;  %v744_v14 = vld [vmem:[#allocation11 + $0x14] sm:$0xf0] }
  0x33   :  { %375 = vmatpush.bf16.msra.mxu2 %v736_v29 }
  0x34   :  { %493 = vmatpush.bf16.msra.mxu3 %v687_v55 }
  0x35   :  { %207 = vmatpush.bf16.msra.mxu0 %v718_v10  ;;  %v671_v10 = vor.u32 %v746_v8, %v670_v7 }
  0x36   :  { %292 = vmatpush.bf16.msra.mxu1 %v726_v15  ;;  %v743_v15 = vld [vmem:[#allocation11 + $0x14] sm:$0xf] }
  0x37   :  { %376 = vmatpush.bf16.msra.mxu2 %v735_v30  ;;  %v667_v18 = vor.u32 %v743_v15, %v664_v17 }
  0x38   :  { %494 = vmatpush.bf16.msra.mxu3 %v679_v4 }
  0x39   :  { %208 = vmatpush.bf16.msra.mxu0 %v717_v11  ;;  %v672_v11 = vld [vmem:[#allocation11 + $0x28] sm:$0xf0] }
  0x3a   :  { %293 = vmatpush.bf16.msra.mxu1 %v725_v16  ;;  %v663_v16 = vor.u32 %v744_v14, %v662_v13 }
  0x3b   :  { %377 = vmatpush.bf16.msra.mxu2 %v734_v31 }
  0x3c   :  { %209 = vmatmul.bf16.vlgmr.msra.gmra.mxu0 %v716_v12  ;;  %v675_v12 = vor.u32 %v745_v9, %v672_v11  ;;  %495 = vmatpush.bf16.msra.mxu3 %v671_v10 }
  0x3d   :  { %504 = vmatpush.bf16.msrb.mxu0 %v715_v40 }
  0x3f   :  { %378 = vmatpush.bf16.msra.mxu2 %v733_v32 }
  0x40   :  { %496 = vmatpush.bf16.msra.mxu3 %v663_v16 }
  0x41   :  { %505 = vmatpush.bf16.msrb.mxu0 %v707_v44 }
  0x45   :  { %506 = vmatpush.bf16.msrb.mxu0 %v699_v50 }
  0x49   :  { %507 = vmatpush.bf16.msrb.mxu0 %v691_v56 }
  0x4d   :  { %508 = vmatpush.bf16.msrb.mxu0 %v683_v6 }
  0x51   :  { %509 = vmatpush.bf16.msrb.mxu0 %v675_v12 }
  0x55   :  { %510 = vmatpush.bf16.msrb.mxu0 %v667_v18 }
  0xb9   :  { %v210_v21 = vpop.f32.mrf.mxu0 }
  0xba   :  { %v211_v23 = vadd.f32 %v770_v22, %v210_v21  ;;  %v741_v21 = vld [vmem:[#allocation11 + $0x4] sm:$0xf] }
  0xbc   :  { %v215_v26 = vmax.f32 %v211_v23, 0.0  ;;  %v656_v23 = vld [vmem:[#allocation11 + $0x8] sm:$0xf0] }
  0xc1   :  { %v212_v24 = vpop.f32.mrf.mxu0 }
  0xc2   :  { %v213_v25 = vadd.f32 %v770_v22, %v212_v24  ;;  %v655_v22 = vor.u32 %v742_v20, %v654_v19  ;;  %v659_v24 = vor.u32 %v741_v21, %v656_v23 }
  0xc4   :  { %v216_v27 = vmax.f32 %v213_v25, 0.0  ;;  %497 = vmatpush.bf16.msra.mxu3 %v655_v22  ;;  %511 = vmatpush.bf16.msrb.mxu0 %v659_v24 }
  0xc6   :  { %v217_v28 = vpack.c.bf16 %v216_v27, %v215_v26  ;;  %v772_v26 = vld [vmem:[%s1066_s6] ss:$0 sm:$0xff]  ;;  %s965_s6 = smov [#allocation13]  }
  0xc7   :  { %s534_s8 = sshll.u32 %s965_s6, 4  ;;  %s535_s8 = int_to_ptr.vmem [resolvable:$true] %s534_s8 }
  0xc8   :  { %294 = vmatmul.bf16.vlgmr.msra.gmra.mxu1 %v217_v28 }
 0x145   :  { %v295_v57 = vpop.f32.mrf.mxu1 }
 0x146   :  { %v296_v59 = vadd.f32 %v771_v58, %v295_v57 }
 0x148   :  { %v300_v62 = vmax.f32 %v296_v59, 0.0 }
 0x14d   :  { %v297_v60 = vpop.f32.mrf.mxu1 }
 0x14e   :  { %v298_v61 = vadd.f32 %v771_v58, %v297_v60 }
 0x150   :  { %v301_v63 = vmax.f32 %v298_v61, 0.0 }
 0x152   :  { %v302_v0 = vpack.c.bf16 %v301_v63, %v300_v62 }
 0x154   :  { %379 = vmatmul.bf16.vlgmr.msra.gmra.mxu2 %v302_v0 }
 0x1d7   :  { %v380_v25 = vpop.f32.mrf.mxu2 }
 0x1d8   :  { %v381_v27 = vadd.f32 %v772_v26, %v380_v25 }
 0x1da   :  { %v385_v30 = vmax.f32 %v381_v27, 0.0 }
 0x1df   :  { %v382_v28 = vpop.f32.mrf.mxu2 }
 0x1e0   :  { %v383_v29 = vadd.f32 %v772_v26, %v382_v28 }
 0x1e2   :  { %v386_v31 = vmax.f32 %v383_v29, 0.0 }
 0x1e4   :  { %v387_v32 = vpack.c.bf16 %v386_v31, %v385_v30 }
 0x1e6   :  { %498 = vmatmul.bf16.vlgmr.msra.gmra.mxu3 %v387_v32  ;;  %512 = vmatmul.bf16.vlgmr.msrb.gmra.mxu0 %v387_v32 }
 0x263   :  { %v513_v35 = vpop.f32.mrf.mxu0 }
 0x264   :  { %v514_v36 = vadd.f32 %v513_v35, %v407_v34 }
 0x266   :  { %v518_v37 = vmul.f32 1.442695, %v514_v36 }
 0x268   :  { %773 = vpow2.f32 %v518_v37 }
 0x269   :  { %v499_v39 = vpop.f32.mrf.mxu3 }
 0x26a   :  { %v500_v40 = vadd.f32 %v499_v39, %v406_v38 }
 0x26b   :  { %v515_v41 = vpop.f32.mrf.mxu0 }
 0x26c   :  { %526 = vst [vmem:[#allocation13] sm:$0xff] %v500_v40  ;;  %v516_v42 = vadd.f32 %v515_v41, %v407_v34 }
 0x26e   :  { %v774_v43 = vpop.eup %773  ;;  %v520_v44 = vmul.f32 1.442695, %v516_v42 }
 0x26f   :  { %v522_v45 = vmax.f32 %v774_v43, 1e-05 }
 0x270   :  { %775 = vpow2.f32 %v520_v44 }
 0x271   :  { %v524_v46 = vmin.f32 %v522_v45, 10.0  ;;  %v501_v47 = vpop.f32.mrf.mxu3 }
 0x272   :  { %v502_v48 = vadd.f32 %v501_v47, %v406_v38 }
 0x273   :  { %527 = vst [vmem:[#allocation13 + $0x8] sm:$0xff] %v524_v46 }
 0x274   :  { %528 = vst [vmem:[#allocation13 + $0x10] sm:$0xff] %v502_v48 }
 0x276   :  { %v776_v49 = vpop.eup %775 }
 0x277   :  { %v523_v50 = vmax.f32 %v776_v49, 1e-05 }
 0x279   :  { %v525_v51 = vmin.f32 %v523_v50, 10.0 }
 0x27b   :  { %529 = vst [vmem:[#allocation13 + $0x18] sm:$0xff] %v525_v51 }
 0x27c   :  { %542 = dma.vmem_to_hbm [thread:$0]  %s535_s8, 512, %s537_s1, [#allocation4], %s966_s23, %s966_s23, %s967_s24  }
 0x27d   :  { %953 = dma.done.wait [#allocation4], 512  }
 0x27e   :  { %954 = vsyncadd [#allocation4], 4294966784 }
 0x27f   :  { %547 = vsyncpa [#allocation3], 1 }
 0x280   :  { %548 = vsyncpa [#allocation6], 1 }
 0x281   :  { %549 = vsyncpa [#allocation9], 1 }
 0x282   :  { %550 = vsyncpa [#allocation12], 1 }
 0x283   :  { %551 = vsyncpa [#allocation4], 1 }

</bundles_post_ra>
